<compile_context>
chip_gen: v5e
topology: v5e:2x2
jax: 0.10.0
libtpu: 0.0.40
codegen_flags: <defaults>
</compile_context>

<pallas_src>
import functools
import math

import jax
import jax.numpy as jnp
from jax.experimental import pallas as pl
from jax.experimental.pallas import tpu as pltpu


def _channel_attention_kernel(x_ref, w1t_ref, w2t_ref, o_ref,
                              sum_acc, max_acc, *, hw, hw_tile):
    """One grid step: accumulate sum/max pools over an HW tile; on the last HW
    step run the shared MLP (fc2(relu(fc1(.)))) once on [avg; max] and write
    the sigmoid attention.

    Blocks:
      x_ref   : (B_TILE, C, HW_TILE)
      w1t_ref : (C, C//16)
      w2t_ref : (C//16, C)
      o_ref   : (B_TILE, 1, C)
    """
    k = pl.program_id(1)
    nk = pl.num_programs(1)

    x = x_ref[...].astype(jnp.float32)          # f32 accumulate (bf16-safe input)

    def _accumulate(part_sum, part_max):
        @pl.when(k == 0)
        def _():
            sum_acc[...] = part_sum
            max_acc[...] = part_max

        @pl.when(k > 0)
        def _():
            sum_acc[...] = sum_acc[...] + part_sum
            max_acc[...] = jnp.maximum(max_acc[...], part_max)

    if hw % hw_tile == 0:
        # Every HW tile is full: never pay the lane mask.
        _accumulate(jnp.sum(x, axis=-1), jnp.max(x, axis=-1))
    else:
        # Hot path (all but the last tile): plain unmasked reductions.
        @pl.when(k < nk - 1)
        def _():
            _accumulate(jnp.sum(x, axis=-1), jnp.max(x, axis=-1))

        # Only the final, partial HW tile pays the iota/compare/select mask.
        @pl.when(k == nk - 1)
        def _():
            lane = k * hw_tile + jax.lax.broadcasted_iota(jnp.int32, x.shape, 2)
            valid = lane < hw
            _accumulate(jnp.sum(jnp.where(valid, x, 0.0), axis=-1),
                        jnp.max(jnp.where(valid, x, -jnp.inf), axis=-1))

    # TODO(synk): on v7x, if profiling shows VALU saturation, offload the sum
    # pool onto the idle MXU (dot with a ones column) and keep only max on VPU.

    @pl.when(k == nk - 1)
    def _():
        avg = sum_acc[...] * (1.0 / hw)          # (B, C), true-HW divisor
        mx = max_acc[...]                        # (B, C)
        # Padded rows of a partial batch tile hold stale VMEM; sanitize so they
        # cannot surface NaN/inf (their out-of-bounds writeback is dropped).
        avg = jnp.where(jnp.isfinite(avg), avg, 0.0)
        mx = jnp.where(jnp.isfinite(mx), mx, 0.0)
        pooled = jnp.concatenate([avg, mx], axis=0)          # (2B, C)
        # Shared MLP run ONCE over both pooled vectors.
        h = jnp.dot(pooled, w1t_ref[...], preferred_element_type=jnp.float32)
        h = jnp.maximum(h, 0.0)
        out = jnp.dot(h, w2t_ref[...], preferred_element_type=jnp.float32)
        b = avg.shape[0]
        att = jax.nn.sigmoid(out[:b] + out[b:])              # (B, C)
        o_ref[:, 0, :] = att.astype(o_ref.dtype)


def _chip_params():
    """Generation-aware (x-double-buffer budget, vmem_limit_bytes, #TensorCores)."""
    try:
        info = pltpu.get_tpu_info()
        vmem_cap = int(getattr(info, "vmem_capacity_bytes", 0) or 0)
        cores = int(getattr(info, "num_cores", 0) or 0)
    except Exception:
        vmem_cap, cores = 0, 0

    if vmem_cap >= 96 * 1024 * 1024:
        # v5e / v6e: 128 MiB physical VMEM, single TensorCore per chip.
        return 80 * 1024 * 1024, 100 * 1024 * 1024, (cores or 1)
    if vmem_cap > 0:
        # v7x: 64 MiB per TensorCore, 2 TensorCores per chip.
        return 32 * 1024 * 1024, 48 * 1024 * 1024, (cores or 2)
    # Unknown (e.g. interpret mode / probe failure): conservative on all fronts.
    return 32 * 1024 * 1024, 48 * 1024 * 1024, (cores or 2)


def _best_hw_tile(hw, max_lanes):
    """Largest multiple of 128 <= max_lanes, preferring one that divides hw so
    every grid step stays on the unmasked path with dense DMAs."""
    max_lanes = max(128, (max_lanes // 128) * 128)
    if max_lanes >= hw:
        return hw
    t = max_lanes
    while t >= 128:
        if hw % t == 0:
            return t
        t -= 128
    return max_lanes


def _choose_tiles(n, c, hw, itemsize, budget, num_cores):
    """Pick (b_tile, hw_tile) so the double-buffered x block stays <= budget."""
    per_sample = 2 * c * hw * itemsize          # double-buffered bytes / sample
    if per_sample <= budget:
        hw_tile = hw
        b_tile = max(1, min(n, budget // per_sample))
        if num_cores > 1 and n >= num_cores:
            # Keep >= num_cores "parallel" batch grid steps so every
            # TensorCore (v7x megacore) gets work.  Single-TC chips skip this.
            b_tile = min(b_tile, -(-n // num_cores))
    else:
        b_tile = 1
        hw_tile = _best_hw_tile(hw, budget // (2 * c * itemsize))
    return b_tile, hw_tile


def channel_attention(x_nchw, w1t, w2t, *, b_tile=None, hw_tile=None):
    """x_nchw: (N, C, H, W) f32/bf16; returns sigmoid channel attention (N, C, 1, 1) f32."""
    n, c, h, w = x_nchw.shape
    hw = h * w
    hidden = w1t.shape[1]
    assert w1t.shape == (c, hidden) and w2t.shape == (hidden, c)

    x_flat = x_nchw.reshape(n, c, hw)
    budget, vmem_limit, num_cores = _chip_params()

    auto_b, auto_hw = _choose_tiles(n, c, hw, jnp.dtype(x_flat.dtype).itemsize,
                                    budget, num_cores)
    b_tile = auto_b if b_tile is None else max(1, min(b_tile, n))
    hw_tile = auto_hw if hw_tile is None else max(1, min(hw_tile, hw))

    grid = (pl.cdiv(n, b_tile), pl.cdiv(hw, hw_tile))
    # TODO(synk): on v7x with a single batch grid step (e.g. N=1) one TC idles;
    # splitting the HW axis across cores would need a cross-core partial merge.

    kernel = functools.partial(_channel_attention_kernel, hw=hw, hw_tile=hw_tile)

    out = pl.pallas_call(
        kernel,
        out_shape=jax.ShapeDtypeStruct((n, 1, c), jnp.float32),
        grid_spec=pltpu.PrefetchScalarGridSpec(
            num_scalar_prefetch=0,
            grid=grid,
            in_specs=[
                pl.BlockSpec((b_tile, c, hw_tile), lambda i, k: (i, 0, k)),
                pl.BlockSpec((c, hidden), lambda i, k: (0, 0)),
                pl.BlockSpec((hidden, c), lambda i, k: (0, 0)),
            ],
            out_specs=pl.BlockSpec((b_tile, 1, c), lambda i, k: (i, 0, 0)),
            scratch_shapes=[
                pltpu.VMEM((b_tile, c), jnp.float32),   # running sum
                pltpu.VMEM((b_tile, c), jnp.float32),   # running max
            ],
        ),
        compiler_params=pltpu.CompilerParams(
            dimension_semantics=("parallel", "arbitrary"),
            vmem_limit_bytes=vmem_limit,
        ),
    )(x_flat, w1t, w2t)

    return out.reshape(n, c, 1, 1)


def _init_weights(key, in_planes):
    """Deterministic init mimicking PyTorch Conv2d kaiming_uniform defaults."""
    hidden = in_planes // 16
    k1, k2 = jax.random.split(key)
    bound1 = 1.0 / math.sqrt(in_planes) * math.sqrt(3.0)   # fc1 fan_in = in_planes
    w1 = jax.random.uniform(k1, (hidden, in_planes), jnp.float32,
                            minval=-bound1, maxval=bound1)
    bound2 = 1.0 / math.sqrt(hidden) * math.sqrt(3.0)      # fc2 fan_in = hidden
    w2 = jax.random.uniform(k2, (in_planes, hidden), jnp.float32,
                            minval=-bound2, maxval=bound2)
    return w1.T, w2.T  # (C, hidden), (hidden, C)


def _reference(x, w1t, w2t):
    # Pure-JAX reference of the PyTorch forward.
    avg = jnp.mean(x, axis=(2, 3))            # (N, C)
    mx = jnp.max(x, axis=(2, 3))              # (N, C)

    def mlp(v):
        return jnp.maximum(v @ w1t, 0.0) @ w2t

    out = jax.nn.sigmoid(mlp(avg) + mlp(mx))  # (N, C)
    return out[:, :, None, None]


if __name__ == "__main__":
    key = jax.random.PRNGKey(0)
    kx1, kx2, kx3, kw = jax.random.split(key, 4)

    N, C, H, W = 2, 32, 16, 16                 # in_planes=32 -> hidden=2
    x = jax.random.normal(kx1, (N, C, H, W), jnp.float32)
    w1t, w2t = _init_weights(kw, C)

    # Case 1: single-HW-block fast path, auto tiles.
    y = channel_attention(x, w1t, w2t)
    jax.block_until_ready(y)
    y_ref = _reference(x, w1t, w2t)
    assert y.shape == (N, C, 1, 1)
    assert jnp.allclose(y, y_ref, atol=1e-5, rtol=1e-5), "case1 mismatch vs reference"

    # Case 2: exercise the HW-tiled accumulator path with a masked final HW
    # tile (400 = 3*128 + 16) and a partial batch tile (3 = 2 + 1).  Tiny tiles
    # are deliberately forced here only to hit that code path.
    N2, H2, W2 = 3, 20, 20
    x2 = jax.random.normal(kx2, (N2, C, H2, W2), jnp.float32)
    y2 = channel_attention(x2, w1t, w2t, b_tile=2, hw_tile=128)
    jax.block_until_ready(y2)
    y2_ref = _reference(x2, w1t, w2t)
    assert y2.shape == (N2, C, 1, 1)
    assert jnp.allclose(y2, y2_ref, atol=1e-5, rtol=1e-5), "case2 mismatch vs reference"

    # Case 3: bf16 input path (halves HBM bytes; f32 accumulation in-kernel).
    x3 = jax.random.normal(kx3, (N, C, H, W), jnp.float32).astype(jnp.bfloat16)
    y3 = channel_attention(x3, w1t, w2t)
    jax.block_until_ready(y3)
    y3_ref = _reference(x3.astype(jnp.float32), w1t, w2t)
    assert jnp.allclose(y3, y3_ref, atol=2e-2, rtol=2e-2), "case3 mismatch vs reference"

    print("KERNEL_OK")
</pallas_src>

<mosaic_0001>
module attributes {stable_mosaic.version = 11 : i64} {
  func.func @_channel_attention_kernel(%arg0: i32, %arg1: i32, %arg2: memref<1x32x256xf32, #tpu.memory_space<vmem>>, %arg3: memref<32x2xf32, #tpu.memory_space<vmem>>, %arg4: memref<2x32xf32, #tpu.memory_space<vmem>>, %arg5: memref<1x1x32xf32, #tpu.memory_space<vmem>>, %arg6: memref<1x32xf32, #tpu.memory_space<vmem>>, %arg7: memref<1x32xf32, #tpu.memory_space<vmem>>) attributes {dimension_semantics = [#tpu.dimension_semantics<parallel>, #tpu.dimension_semantics<arbitrary>], iteration_bounds = array<i64: 2, 1>, scalar_prefetch = 0 : i64, scratch_operands = 2 : i64, tpu.core_type = #tpu.core_type<tc>, window_params = [{transform_indices = @transform_0, window_bounds = array<i64: 1, 32, 256>}, {pipeline_mode = #tpu.pipeline_mode<synchronous>, transform_indices = @transform_1, window_bounds = array<i64: 32, 2>}, {pipeline_mode = #tpu.pipeline_mode<synchronous>, transform_indices = @transform_2, window_bounds = array<i64: 2, 32>}, {transform_indices = @transform_3, window_bounds = array<i64: 1, 1, 32>}]} {
    %c0 = arith.constant 0 : index
    %c0_0 = arith.constant 0 : index
    %c0_1 = arith.constant 0 : index
    %0 = vector.load %arg2[%c0, %c0_0, %c0_1] : memref<1x32x256xf32, #tpu.memory_space<vmem>>, vector<1x32x256xf32>
    %cst = arith.constant dense<0.000000e+00> : vector<1x32xf32>
    %1 = vector.multi_reduction <add>, %0, %cst [2] : vector<1x32x256xf32> to vector<1x32xf32>
    %cst_2 = arith.constant dense<0xFF800000> : vector<1x32xf32>
    %2 = vector.multi_reduction <maximumf>, %0, %cst_2 [2] : vector<1x32x256xf32> to vector<1x32xf32>
    %c0_i32 = arith.constant 0 : i32
    %3 = arith.cmpi eq, %arg1, %c0_i32 : i32
    %4 = arith.extui %3 : i1 to i32
    %c0_i32_3 = arith.constant 0 : i32
    %5 = arith.cmpi ne, %4, %c0_i32_3 : i32
    scf.if %5 {
      %c0_8 = arith.constant 0 : index
      %c0_9 = arith.constant 0 : index
      %12 = vector.load %arg6[%c0_8, %c0_9] : memref<1x32xf32, #tpu.memory_space<vmem>>, vector<1x32xf32>
      tpu.vector_store %arg6[%c0_8, %c0_9], %1 {strides = array<i32>} : memref<1x32xf32, #tpu.memory_space<vmem>>, vector<1x32xf32>,
      %c0_10 = arith.constant 0 : index
      %c0_11 = arith.constant 0 : index
      %13 = vector.load %arg7[%c0_10, %c0_11] : memref<1x32xf32, #tpu.memory_space<vmem>>, vector<1x32xf32>
      tpu.vector_store %arg7[%c0_10, %c0_11], %2 {strides = array<i32>} : memref<1x32xf32, #tpu.memory_space<vmem>>, vector<1x32xf32>,
    } else {
    }
    %c0_i32_4 = arith.constant 0 : i32
    %6 = arith.cmpi sgt, %arg1, %c0_i32_4 : i32
    %7 = arith.extui %6 : i1 to i32
    %c0_i32_5 = arith.constant 0 : i32
    %8 = arith.cmpi ne, %7, %c0_i32_5 : i32
    scf.if %8 {
      %c0_8 = arith.constant 0 : index
      %c0_9 = arith.constant 0 : index
      %12 = vector.load %arg6[%c0_8, %c0_9] : memref<1x32xf32, #tpu.memory_space<vmem>>, vector<1x32xf32>
      %13 = arith.addf %12, %1 : vector<1x32xf32>
      %c0_10 = arith.constant 0 : index
      %c0_11 = arith.constant 0 : index
      %14 = vector.load %arg6[%c0_10, %c0_11] : memref<1x32xf32, #tpu.memory_space<vmem>>, vector<1x32xf32>
      tpu.vector_store %arg6[%c0_10, %c0_11], %13 {strides = array<i32>} : memref<1x32xf32, #tpu.memory_space<vmem>>, vector<1x32xf32>,
      %c0_12 = arith.constant 0 : index
      %c0_13 = arith.constant 0 : index
      %15 = vector.load %arg7[%c0_12, %c0_13] : memref<1x32xf32, #tpu.memory_space<vmem>>, vector<1x32xf32>
      %16 = arith.maximumf %15, %2 : vector<1x32xf32>
      %c0_14 = arith.constant 0 : index
      %c0_15 = arith.constant 0 : index
      %17 = vector.load %arg7[%c0_14, %c0_15] : memref<1x32xf32, #tpu.memory_space<vmem>>, vector<1x32xf32>
      tpu.vector_store %arg7[%c0_14, %c0_15], %16 {strides = array<i32>} : memref<1x32xf32, #tpu.memory_space<vmem>>, vector<1x32xf32>,
    } else {
    }
    %c0_i32_6 = arith.constant 0 : i32
    %9 = arith.cmpi eq, %arg1, %c0_i32_6 : i32
    %10 = arith.extui %9 : i1 to i32
    %c0_i32_7 = arith.constant 0 : i32
    %11 = arith.cmpi ne, %10, %c0_i32_7 : i32
    scf.if %11 {
      %c0_8 = arith.constant 0 : index
      %c0_9 = arith.constant 0 : index
      %12 = vector.load %arg6[%c0_8, %c0_9] : memref<1x32xf32, #tpu.memory_space<vmem>>, vector<1x32xf32>
      %cst_10 = arith.constant 3.906250e-03 : f32
      %13 = vector.broadcast %cst_10 : f32 to vector<1x32xf32>
      %14 = arith.mulf %12, %13 : vector<1x32xf32>
      %c0_11 = arith.constant 0 : index
      %c0_12 = arith.constant 0 : index
      %15 = vector.load %arg7[%c0_11, %c0_12] : memref<1x32xf32, #tpu.memory_space<vmem>>, vector<1x32xf32>
      %16 = tpu.weird %14 : vector<1x32xf32> -> vector<1x32xi1>
      %cst_13 = arith.constant dense<true> : vector<1x32xi1>
      %17 = arith.xori %16, %cst_13 : vector<1x32xi1>
      %cst_14 = arith.constant 0.000000e+00 : f32
      %18 = vector.broadcast %cst_14 : f32 to vector<1x32xf32>
      %19 = arith.select %17, %14, %18 : vector<1x32xi1>, vector<1x32xf32>
      %20 = tpu.weird %15 : vector<1x32xf32> -> vector<1x32xi1>
      %cst_15 = arith.constant dense<true> : vector<1x32xi1>
      %21 = arith.xori %20, %cst_15 : vector<1x32xi1>
      %cst_16 = arith.constant 0.000000e+00 : f32
      %22 = vector.broadcast %cst_16 : f32 to vector<1x32xf32>
      %23 = arith.select %21, %15, %22 : vector<1x32xi1>, vector<1x32xf32>
      %24 = tpu.concatenate %19, %23 in 0 : vector<1x32xf32>, vector<1x32xf32> -> vector<2x32xf32>
      %c0_17 = arith.constant 0 : index
      %c0_18 = arith.constant 0 : index
      %25 = vector.load %arg3[%c0_17, %c0_18] : memref<32x2xf32, #tpu.memory_space<vmem>>, vector<32x2xf32>
      %cst_19 = arith.constant dense<0.000000e+00> : vector<2x2xf32>
      %26 = tpu.matmul %24, %25, %cst_19 {dimension_numbers = #tpu.dot_dimension_numbers<[1], [0], [0], [1], [0, 0, 1, 1], [], []>} : vector<2x32xf32>, vector<32x2xf32>, vector<2x2xf32> -> vector<2x2xf32>
      %cst_20 = arith.constant 0.000000e+00 : f32
      %27 = vector.broadcast %cst_20 : f32 to vector<2x2xf32>
      %28 = arith.maximumf %26, %27 : vector<2x2xf32>
      %c0_21 = arith.constant 0 : index
      %c0_22 = arith.constant 0 : index
      %29 = vector.load %arg4[%c0_21, %c0_22] : memref<2x32xf32, #tpu.memory_space<vmem>>, vector<2x32xf32>
      %cst_23 = arith.constant dense<0.000000e+00> : vector<2x32xf32>
      %30 = tpu.matmul %28, %29, %cst_23 {dimension_numbers = #tpu.dot_dimension_numbers<[1], [0], [0], [1], [0, 0, 1, 1], [], []>} : vector<2x2xf32>, vector<2x32xf32>, vector<2x32xf32> -> vector<2x32xf32>
      %31 = vector.extract_strided_slice %30 {offsets = [0, 0], sizes = [1, 32], strides = [1, 1]} : vector<2x32xf32> to vector<1x32xf32>
      %32 = vector.extract_strided_slice %30 {offsets = [1, 0], sizes = [1, 32], strides = [1, 1]} : vector<2x32xf32> to vector<1x32xf32>
      %33 = arith.addf %31, %32 : vector<1x32xf32>
      %34 = arith.negf %33 : vector<1x32xf32>
      %35 = math.exp %34 : vector<1x32xf32>
      %cst_24 = arith.constant 1.000000e+00 : f32
      %36 = vector.broadcast %cst_24 : f32 to vector<1x32xf32>
      %37 = arith.addf %36, %35 : vector<1x32xf32>
      %38 = arith.divf %36, %37 : vector<1x32xf32>
      %c0_25 = arith.constant 0 : index
      %c0_26 = arith.constant 0 : index
      %c0_27 = arith.constant 0 : index
      %39 = vector.load %arg5[%c0_25, %c0_26, %c0_27] : memref<1x1x32xf32, #tpu.memory_space<vmem>>, vector<1x1x32xf32>
      %40 = vector.shape_cast %39 : vector<1x1x32xf32> to vector<1x32xf32>
      %41 = vector.shape_cast %38 : vector<1x32xf32> to vector<1x1x32xf32>
      tpu.vector_store %arg5[%c0_25, %c0_26, %c0_27], %41 {strides = array<i32>} : memref<1x1x32xf32, #tpu.memory_space<vmem>>, vector<1x1x32xf32>,
    } else {
    }
    return
  }
  func.func @transform_0(%arg0: i32, %arg1: i32) -> (i32, i32, i32) {
    %c0_i32 = arith.constant 0 : i32
    %c0_i32_0 = arith.constant 0 : i32
    return %arg0, %c0_i32, %arg1 : i32, i32, i32
  }
  func.func @transform_1(%arg0: i32, %arg1: i32) -> (i32, i32) {
    %c0_i32 = arith.constant 0 : i32
    %c0_i32_0 = arith.constant 0 : i32
    %c0_i32_1 = arith.constant 0 : i32
    return %c0_i32, %c0_i32_0 : i32, i32
  }
  func.func @transform_2(%arg0: i32, %arg1: i32) -> (i32, i32) {
    %c0_i32 = arith.constant 0 : i32
    %c0_i32_0 = arith.constant 0 : i32
    %c0_i32_1 = arith.constant 0 : i32
    return %c0_i32, %c0_i32_0 : i32, i32
  }
  func.func @transform_3(%arg0: i32, %arg1: i32) -> (i32, i32, i32) {
    %c0_i32 = arith.constant 0 : i32
    %c0_i32_0 = arith.constant 0 : i32
    %c0_i32_1 = arith.constant 0 : i32
    return %arg0, %c0_i32, %c0_i32_0 : i32, i32, i32
  }
}

</mosaic_0001>

<bundles_post_ra>
// kernel: tpu_custom_call.1
= control target key start
LH: loop header
LB: loop body
LE: loop exit
PB: predicated region body
PF: predicated region fallthrough
CT: control target
= control target key end

     0   :  { %8 = vsyncpa [#allocation5], 0  ;;  %s1046_s0 = inlined_call_operand.hbm [shape: f32[2,32,256], index: 0, kind: input, shape index: {}]   ;;  %s1047_s1 = inlined_call_operand.vmem [shape: f32[32,2], index: 1, kind: input, shape index: {}]   ;;  %s1048_s2 = inlined_call_operand.vmem [shape: f32[2,32], index: 2, kind: input, shape index: {}]   ;;  %s1049_s3 = inlined_call_operand.hbm [shape: f32[2,1,32], index: 3, kind: output, shape index: {}]  }
   0x1   :  { %10 = vsyncpa [#allocation5 + $0x1], 0 }
   0x2   :  { %11 = vsyncpa [#allocation6], 0 }
   0x3   :  { %13 = vsyncpa [#allocation6 + $0x1], 0  ;;  %s907_s12 = smov 0   ;;  %s909_s13 = smov 0  }
   0x4   :  { %s911_s14 = smov 0   ;;  %s913_s15 = smov 0  }
   0x5   :  { %s915_s16 = smov 0   ;;  %s917_s17 = smov 0  }
   0x6 LB: > { %s685_s18 = sadd.s32 4294967295, %s882_s17   ;;  %s686_s19 = sadd.s32 4294967294, %s882_s17   ;;  %s882_s17 = sphi %s917_s17, %s19_s17   ;;  %s878_s16 = sphi %s915_s16, %s1058_s16   ;;  %s874_s15 = sphi %s913_s15, %s1057_s15   ;;  %s870_s14 = sphi %s911_s14, %s1056_s14   ;;  %s866_s13 = sphi %s909_s13, %s1055_s13   ;;  %s862_s12 = sphi %s907_s12, %s1054_s12  }
   0x7   : > { %s31_s20 = sadd.s32 1, %s878_s16  ;;  %s40_s21 = sadd.s32 1, %s870_s14 }
   0x8   : > { %p33_p0 = scmp.ge.s32.totalorder %s31_s20, 2  ;;  %p47_p1 = scmp.ne.s32.totalorder %s870_s14, %s866_s13 }
   0x9   : > { %p48_p2 = scmp.eq.s32.totalorder %s882_s17, 0  ;;  %p53_p3 = scmp.ne.s32.totalorder %s866_s13, %s862_s12 }
   0xa   : > { %s1060_s20 = smov (%p33_p0, %s31_s20), 0  ;;  %p54_p5 = scmp.eq.s32.totalorder %s685_s18, 0 }
   0xb   : > { %p948_p4 = por %p48_p2, %p47_p1  ;;  %s35_s23 = ssub.s32 %s878_s16, %s1060_s20 }
   0xc   : > { %p119_p6 = scmp.eq.s32.totalorder %s685_s18, 1  ;;  %p38_p7 = scmp.eq.s32.totalorder %s35_s23, 0 }
   0xd   : > { %p954_p8 = por %p54_p5, %p53_p3  ;;  %p125_p10 = scmp.eq.s32.totalorder %s686_s19, 1 }
   0xe   : > { %p958_p9 = por %p119_p6, %p47_p1  ;;  %p688_p12 = scmp.ge.s32.totalorder %s882_s17, 2 }
   0xf   : > { %s963_s26 = scalar_select %p38_p7, %s870_s14, %s40_s21  }
  0x10   : > { %p965_p11 = por %p125_p10, %p53_p3  ;;  %p713_p13 = scmp.lt.s32.totalorder %s882_s17, 2 }
  0x11   : > { %s151_s28 = sand.u32 1, %s870_s14   ;;  %s700_s30 = sshll.u32 %s878_s16, 6 }
  0x12   : > { %s689_s29 = sshll.u32 %s151_s28, 6  ;;  %s162_s6 = scalar_lea.hbm %s1046_s0, %s700_s30 }
  0x13   : > { %s155_s7 = scalar_lea.vmem [#allocation4], %s689_s29  ;;  %s163_s9 = sshll.u32 %s162_s6, 4  ;;  %s164_s9 = int_to_ptr.hbm [resolvable:$true] %s163_s9 }
  0x14   : > { %s165_s8 = sshll.u32 %s155_s7, 4  ;;  %p706_p0 = pnand %p713_p13, %p948_p4  ;;  %s166_s8 = int_to_ptr.vmem [resolvable:$true] %s165_s8 }
  0x15   : > { %p692_p1 = scmp.ge.s32.totalorder %s882_s17, 1  ;;  %s152_s10 = scalar_lea.sflag [#allocation5], %s151_s28 }
  0x16   : > { %s884_s11 = smov 256   ;;  %s885_s18 = smov 16  }
  0x17   : > { %708 = dma.hbm_to_vmem [thread:$0]  (!%p706_p0), %s164_s9, 1024, %s166_s8, %s152_s10, %s884_s11, %s884_s11, %s885_s18  }
  0x18   : > { %p173_p2 = scmp.lt.s32.totalorder %s882_s17, 3 }
  0x1a   : > { %p174_p3 = pnand %p692_p1, %p173_p2 }
  0x1b   : > { %s981_s19 = sand.u32 (!%p174_p3), 1, %s866_s13  }
  0x1c   : > { %177 = sbr.rel (%p174_p3) target bundleno = 476 (0x1dc), region = 32  ;;  %s693_s21 = sshll.u32 (!%p174_p3), %s981_s19, 6 }
  0x1d   : > { %s180_s23 = scalar_lea.sflag (!%p174_p3), [#allocation5], %s981_s19  ;;  %s183_s29 = scalar_lea.vmem (!%p174_p3), [#allocation4], %s693_s21 }
  0x21   : > { %853 = dma.done.wait (%p954_p8), %s180_s23, 1024  }
  0x22   : > { %855 = vsyncadd (%p954_p8), %s180_s23, 4294966272  ;;  %v207_v0 = vld [vmem:[%s183_s29] sm:$0xff]  ;;  %v208_v1 = vld [vmem:[%s183_s29 + $0x8] sm:$0xff]  ;;  %v247_v22 = vlaneseq  ;;  %vm252_vm0 = vcmask 130112   ;;  %vm256_vm1 = vcmask 195712   ;;  %vm260_vm2 = vcmask 261312   ;;  %s604_s18 = scalar_lea.hbm %s1049_s3, %s874_s15 }
  0x23   : > { %v211_v2 = vld [vmem:[%s183_s29 + $0x20] sm:$0xff]  ;;  %v227_v3 = vmax.f32 %v207_v0, %v208_v1  ;;  %v215_v4 = vadd.f32 %v208_v1, %v207_v0  ;;  %v212_v5 = vld [vmem:[%s183_s29 + $0x28] sm:$0xff]  ;;  %v209_v7 = vld [vmem:[%s183_s29 + $0x10] sm:$0xff]  ;;  %vm263_vm3 = vcmask 253952   ;;  %vm886_vm5 = vmmov 1   ;;  %s205_s21 = scalar_lea.vmem [#allocation7], %s981_s19 }
  0x24   : > { %v221_v6 = vadd.f32 %v212_v5, %v211_v2  ;;  %v210_v8 = vld [vmem:[%s183_s29 + $0x18] sm:$0xff]  ;;  %v233_v11 = vmax.f32 %v211_v2, %v212_v5  ;;  %v213_v12 = vld [vmem:[%s183_s29 + $0x30] sm:$0xff]  ;;  %v513_v18 = vld [vmem:[%s1047_s1 + $0x8] sm:$0xff]  ;;  %v248_v24 = vand.u32 127, %v247_v22  ;;  %vm510_vm8 = vcmask 1040384   ;;  %s606_s23 = sshll.u32 %s205_s21, 4  ;;  %s607_s23 = int_to_ptr.vmem [resolvable:$true] %s606_s23 }
  0x25   : > { %228 = vmax.xlane.f32.xlu1 %v227_v3  ;;  %216 = vadd.xlane.f32.xlu0 %v215_v4  ;;  %v230_v9 = vmax.f32 %v209_v7, %v210_v8  ;;  %v218_v10 = vadd.f32 %v210_v8, %v209_v7  ;;  %v214_v13 = vld [vmem:[%s183_s29 + $0x38] sm:$0xff]  ;;  %v514_v17 = vld [vmem:[%s1047_s1 + $0x10] sm:$0xff]  ;;  %vm516_vm10 = vcmask 261120   ;;  %vm546_vm11 = vcmask 1041408   ;;  %s608_s29 = sshll.u32 %s604_s18, 4  ;;  %s596_s15 = scalar_lea.sflag [#allocation6], %s981_s19  ;;  %s609_s29 = int_to_ptr.hbm [resolvable:$true] %s608_s29 }
  0x26   : > { %222 = vadd.xlane.f32.xlu2 %v221_v6  ;;  %v236_v14 = vmax.f32 %v213_v12, %v214_v13  ;;  %v224_v15 = vadd.f32 %v214_v13, %v213_v12  ;;  %v515_v16 = vld [vmem:[%s1047_s1 + $0x18] sm:$0xff]  ;;  %v512_v19 = vld [vmem:[%s1047_s1] sm:$0xff]  ;;  %v250_v25 = vadd.s32 4294967288, %v248_v24  ;;  %v254_v31 = vadd.s32 4294967280, %v248_v24  ;;  %s814_s22 = sshra.s32 %s609_s29, 4  ;;  %s820_s4 = scalar_lea.hbm %s1049_s3, 2  ;;  %s815_s22 = int_to_ptr.hbm [resolvable:$true] %s814_s22 }
  0x27   : > { %532 = vmatpush.msra.mxu0 %v515_v16  ;;  %v258_v34 = vadd.s32 4294967272, %v248_v24  ;;  %v541_v54 = vld [vmem:[%s1048_s2] sm:$0x3]  ;;  %vm542_vm12 = vcmask 15360   ;;  %s816_s24 = scalar_lea.hbm %s815_s22, 1  ;;  %p821_p7 = scmp.lt.s32.totalorder %s815_s22, %s1049_s3 }
  0x28   : > { %695 = vmatpush.msk.msra.mxu1 %vm546_vm11, %v541_v54  ;;  %p817_p4 = scmp.ne.s32.totalorder %s815_s22, %s816_s24  ;;  %p822_p8 = scmp.lt.s32.totalorder %s820_s4, %s816_s24 }
  0x29   : > { %533 = vmatpush.msra.mxu0 %v514_v17 }
  0x2a   : > { %p818_p5 = pnand %p817_p4, %p958_p9  ;;  %p823_p10 = por %p822_p8, %p821_p7 }
  0x2b   : > { %534 = vmatpush.msra.mxu0 %v513_v18 }
  0x2c   : > { %p819_p6 = pneg %p818_p5 }
  0x2d   : > { %231 = vmax.xlane.f32.xlu1 %v230_v9  ;;  %219 = vadd.xlane.f32.xlu0 %v218_v10 }
  0x2e   : > { %234 = vmax.xlane.f32.xlu2 %v233_v11  ;;  %535 = vmatpush.msra.mxu0 %v512_v19  ;;  %p824_p13 = pnand %p823_p10, %p819_p6 }
  0x35   : > { %237 = vmax.xlane.f32.xlu1 %v236_v14  ;;  %225 = vadd.xlane.f32.xlu0 %v224_v15 }
  0x98   : > { %v229_v20 = vpop.xlane.xlu1 %228  ;;  %v217_v21 = vpop.xlane.xlu0 %216 }
  0x99   : > { %v223_v23 = vpop.xlane.xlu2 %222  ;;  %v269_v32 = vperm.slane %v229_v20, %v248_v24  ;;  %v249_v33 = vperm.slane %v217_v21, %v248_v24 }
  0x9a   : > { %v255_v38 = vperm.slane %v223_v23, %v254_v31 }
  0xa0   : > { %v232_v26 = vpop.xlane.xlu1 %231  ;;  %v220_v27 = vpop.xlane.xlu0 %219 }
  0xa1   : > { %v270_v28 = vperm.slane %v232_v26, %v250_v25  ;;  %v251_v29 = vperm.slane %v220_v27, %v250_v25  ;;  %v235_v30 = vpop.xlane.xlu2 %234 }
  0xa2   : > { %v272_v35 = vperm.slane %v235_v30, %v254_v31 }
  0xa3   : > { %v271_v36 = vsel %vm252_vm0, %v270_v28, %v269_v32  ;;  %v253_v37 = vsel %vm252_vm0, %v251_v29, %v249_v33 }
  0xa4   : > { %v273_v43 = vsel %vm256_vm1, %v272_v35, %v271_v36  ;;  %v257_v44 = vsel %vm256_vm1, %v255_v38, %v253_v37 }
  0xa8   : > { %v238_v39 = vpop.xlane.xlu1 %237  ;;  %v226_v40 = vpop.xlane.xlu0 %225 }
  0xa9   : > { %v274_v41 = vperm.slane %v238_v39, %v258_v34  ;;  %v259_v42 = vperm.slane %v226_v40, %v258_v34 }
  0xab   : > { %v275_v45 = vsel %vm260_vm2, %v274_v41, %v273_v43  ;;  %v261_v46 = vsel %vm260_vm2, %v259_v42, %v257_v44 }
  0xac   : > { %277 = vst.msk [vmem:[#allocation3] sm:$0x1] %vm263_vm3, %v275_v45 }
  0xad   : > { %264 = vst.msk [vmem:[#allocation2] sm:$0x1] %vm263_vm3, %v261_v46 }
  0xb3   : > { %v500_v47 = vld [vmem:[#allocation3] sm:$0x1] }
  0xb4   : > { %v498_v48 = vld [vmem:[#allocation2] sm:$0x1]  ;;  %vm504_vm4 = vweird.f32 %v500_v47 }
  0xb5   : > { %v499_v49 = vmul.f32 0.00390625, %v498_v48  ;;  %vm505_vm6 = vmxor %vm504_vm4, %vm886_vm5 }
  0xb6   : > { %v506_v50 = vsel %vm505_vm6, %v500_v47, 0.0 }
  0xb7   : > { %vm501_vm7 = vweird.f32 %v499_v49  ;;  %v508_v51 = vperm.slane %v506_v50, 0 }
  0xb8   : > { %vm502_vm9 = vmxor %vm501_vm7, %vm886_vm5 }
  0xb9   : > { %v503_v52 = vsel %vm502_vm9, %v499_v49, 0.0 }
  0xba   : > { %v511_v53 = vsel %vm510_vm8, %v503_v52, %v508_v51 }
  0xbb   : > { %694 = vmatmul.msk.f32.vlgmr.msra.gmra.mxu0 %vm516_vm10, %v511_v53 }
 0x138   : > { %v537_v55 = vpop.f32.mrf.mxu0 }
 0x139   : > { %v540_v56 = vmax.f32 %v537_v55, 0.0 }
 0x13b   : > { %696 = vmatmul.msk.f32.vlgmr.msra.gmra.mxu1 %vm542_vm12, %v540_v56 }
 0x1b8   : > { %v567_v57 = vpop.f32.mrf.mxu1 }
 0x1b9   : > { %v571_v58 = vrot.slane %v567_v57, 1 }
 0x1bb   : > { %v573_v59 = vadd.f32 %v571_v58, %v567_v57 }
 0x1bd   : > { %v697_v60 = vmul.f32 -1.442695, %v573_v59 }
 0x1bf   : > { %766 = vpow2.f32 %v697_v60 }
 0x1c5   : > { %v767_v61 = vpop.eup %766 }
 0x1c6   : > { %v577_v62 = vadd.f32 1.0, %v767_v61 }
 0x1c8   : > { %768 = vrcp.f32 %v577_v62  ;;  %v589_v2 = vand.u32 2147483648, %v577_v62  ;;  %v587_v4 = vand.u32 2147483647, %v577_v62  ;;  %vm583_vm14 = vweird.f32 %v577_v62 }
 0x1ca   : > { %v590_v6 = vor.u32 1.1754944e-38, %v589_v2  ;;  %vm588_vm0 = vcmp.eq.f32.partialorder %v587_v4, 8.507059e+37 }
 0x1ce   : > { %v769_v63 = vpop.eup %768 }
 0x1cf   : > { %v579_v0 = vmul.f32 %v769_v63, %v577_v62  ;;  %vm584_vm13 = vweird.f32 %v769_v63 }
 0x1d0   : > { %vm585_vm15 = vmor %vm583_vm14, %vm584_vm13 }
 0x1d1   : > { %v580_v1 = vsub.f32 1.0, %v579_v0 }
 0x1d3   : > { %v581_v3 = vmul.f32 %v769_v63, %v580_v1 }
 0x1d5   : > { %v582_v5 = vadd.f32 %v769_v63, %v581_v3 }
 0x1d7   : > { %v586_v7 = vsel %vm585_vm15, %v769_v63, %v582_v5 }
 0x1d8   : > { %v591_v8 = vsel %vm588_vm0, %v590_v6, %v586_v7 }
 0x1d9   : > { %594 = vst.msk [vmem:[%s205_s21] sm:$0x1] %vm263_vm3, %v591_v8 }
 0x1da   : > { %827 = shalt.err (!%p824_p13)
}
 0x1db   : > { %703 = dma.vmem_to_hbm [thread:$0]  (%p958_p9), %s607_s23, 16, %s609_s29, %s596_s15  }
 0x1dc PF: > { %s620_s19 = sand.u32 1, %s862_s12   ;;  %p710_p0 = pnand %p688_p12, %p965_p11 }
 0x1dd   : > { %s621_s7 = scalar_lea.sflag [#allocation6], %s620_s19 }
 0x1de   : > { %p711_p1 = pneg %p710_p0 }
 0x1e0   : > { %857 = dma.done.wait (%p711_p1), %s621_s7, 16  }
 0x1e1   : > { %859 = vsyncadd (%p711_p1), %s621_s7, 4294967280  ;;  %s19_s17 = sadd.s32 1, %s882_s17   ;;  %s1054_s12 = smov %s866_s13 }
 0x1e2   : > { %p16_p2 = scmp.ge.s32.totalorder %s19_s17, 4   ;;  %s1055_s13 = smov %s870_s14 }
 0x1e3   : > { %s1056_s14 = smov %s963_s26  ;;  %s1057_s15 = smov %s878_s16 }
 0x1e4   : > { %s1058_s16 = smov %s1060_s20  ;;  %18 = sbr.rel (!%p16_p2) target bundleno = 6 (0x6), region = 103 }
 0x1e9   :  { %626 = vsyncpa [#allocation5], 1 }
 0x1ea   :  { %628 = vsyncpa [#allocation5 + $0x1], 1 }
 0x1eb   :  { %629 = vsyncpa [#allocation6], 1 }
 0x1ec   :  { %631 = vsyncpa [#allocation6 + $0x1], 1 }

</bundles_post_ra>
